<compile_context>
chip_gen: v5e
topology: v5e:2x2
jax: 0.10.0
libtpu: 0.0.40
codegen_flags: <defaults>
</compile_context>

<pallas_src>
import jax
import jax.numpy as jnp
from jax.experimental import pallas as pl
from jax.experimental.pallas import tpu as pltpu

LN_EPS = 1e-5  # PyTorch nn.LayerNorm default


def _round_up(n: int, m: int) -> int:
    return ((n + m - 1) // m) * m


def _adm_kernel(x_ref, g_ref, be_ref, ws_ref, bs_ref, wcat_ref, bcat_ref,
                out_ref):
    """One row tile: (TILE_R, Din) -> one lane-dense (TILE_R, BLK) output,
    where BLK = round_up(2*Dout, 128) and the output lanes are [loc | desc]."""
    blk = out_ref.shape[-1]

    x = x_ref[...].astype(jnp.float32)                       # (TR, Din)

    # LayerNorm(features)
    mean = jnp.mean(x, axis=-1, keepdims=True)
    xc = x - mean
    var = jnp.mean(xc * xc, axis=-1, keepdims=True)
    ln = xc * jax.lax.rsqrt(var + LN_EPS)                    # EUP rsqrt
    ln = ln * g_ref[...] + be_ref[...]

    # adjusted = LN(x) + shared_linear(x)        (MXU pass 1: (TR,Din)x(Din,Din))
    adjusted = ln + jnp.dot(x, ws_ref[...],
                            preferred_element_type=jnp.float32) + bs_ref[...]

    # One wide fused matmul (MXU pass 2): columns are
    #   [ loc | desc | alpha_logit | beta_logit | ca_loc | ca_desc ]
    # with each pair padded to BLK lanes (128-multiple) in the wrapper.
    z = jnp.dot(adjusted, wcat_ref[...],
                preferred_element_type=jnp.float32) + bcat_ref[...]

    base = z[:, 0 * blk:1 * blk]                 # [loc | desc]   (128-aligned slice)
    gate = jax.nn.sigmoid(z[:, 1 * blk:2 * blk])  # [alpha | beta]
    ca = z[:, 2 * blk:3 * blk]                   # [ca_loc | ca_desc]

    out_ref[...] = (base + gate * ca).astype(out_ref.dtype)


def _default_tile_rows(n: int, din: int, blk: int) -> int:
    """Pick the largest MXU-aligned row tile whose working set fits VMEM."""
    try:
        vmem_bytes = int(pltpu.get_tpu_info().vmem_capacity_bytes)
    except Exception:
        vmem_bytes = 64 << 20  # assume the smallest (v7x per-TC) budget
    f32 = 4
    # Resident operands (Ws, biases, W_cat); default pipelining double-buffers.
    weight_bytes = f32 * (din * din + 3 * din + din * 3 * blk + 3 * blk)
    resident = 2 * weight_bytes
    budget = max(vmem_bytes // 2 - resident, 2 << 20)
    # Per-row: double-buffered x/out tiles + in-kernel f32 temporaries.
    per_row = f32 * (2 * (din + blk) + 3 * din + 4 * blk)
    tr = int(budget // per_row)
    tr = max(8, min(tr, 1024))
    if tr >= 128:
        tr = (tr // 128) * 128        # MXU-aligned M
    else:
        tr = _round_up(tr, 8)
    # Keep >= 2 grid steps when there is enough work (v7x megacore sharding).
    if n >= 256:
        tr = min(tr, max(128, _round_up((n + 1) // 2, 128)))
    return tr


def vectorized_adaptive_decoupling_forward(features, params, *, tile_rows=None):
    """features: (..., Din) float32. Returns (loc_out, desc_out), each (..., Dout)."""
    orig_shape = features.shape
    din = orig_shape[-1]
    dout = params["loc_proj_w"].shape[1]
    blk = _round_up(2 * dout, 128)               # lane-dense group width

    x2d = features.reshape(-1, din)
    n = x2d.shape[0]

    # ---- pack weights: fold cross_attention into the adjusted-projection ----
    wl, bl = params["loc_proj_w"], params["loc_proj_b"]
    wd, bd = params["desc_proj_w"], params["desc_proj_b"]
    wa, ba = params["alpha_w"], params["alpha_b"]
    wb, bb = params["beta_w"], params["beta_b"]
    wc, bc = params["cross_w"], params["cross_b"]

    def pad_w(w):
        return jnp.pad(w, ((0, 0), (0, blk - w.shape[1])))

    def pad_b(b):
        return jnp.pad(b, (0, blk - b.shape[0]))

    w_base = jnp.concatenate([wl, wd], axis=1)                 # loc | desc
    w_gate = jnp.concatenate([wa, wb], axis=1)                 # alpha | beta
    w_ca = jnp.concatenate([wd @ wc, wl @ wc], axis=1)         # ca_loc | ca_desc
    b_base = jnp.concatenate([bl, bd])
    b_gate = jnp.concatenate([ba, bb])
    b_ca = jnp.concatenate([bd @ wc + bc, bl @ wc + bc])

    w_cat = jnp.concatenate([pad_w(w_base), pad_w(w_gate), pad_w(w_ca)], axis=1)
    b_cat = jnp.concatenate([pad_b(b_base), pad_b(b_gate), pad_b(b_ca)]
                            ).reshape(1, -1)                   # (1, 3*blk)

    # ---- row tiling ----
    if tile_rows is None:
        tile_rows = _default_tile_rows(n, din, blk)
    tile_rows = max(8, _round_up(int(tile_rows), 8))
    tile_rows = min(tile_rows, _round_up(n, 8))

    n_pad = _round_up(n, tile_rows)
    if n_pad != n:
        x2d = jnp.pad(x2d, ((0, n_pad - n), (0, 0)))
    grid = (n_pad // tile_rows,)

    def b2(v):
        return v.reshape(1, -1)

    row_spec_in = pl.BlockSpec((tile_rows, din), lambda r: (r, 0))
    row_spec_out = pl.BlockSpec((tile_rows, blk), lambda r: (r, 0))

    def const_spec(shape):
        return pl.BlockSpec(shape, lambda r: (0,) * len(shape))

    in_specs = [
        row_spec_in,                    # x rows
        const_spec((1, din)),           # ln gamma
        const_spec((1, din)),           # ln beta
        const_spec((din, din)),         # shared_linear W
        const_spec((1, din)),           # shared_linear b
        const_spec((din, 3 * blk)),     # packed projection W
        const_spec((1, 3 * blk)),       # packed projection b
    ]

    # Raise the scoped VMEM limit only when the working set needs it
    # (v5e default scoped limit is 16 MiB of 128 MiB physical).
    f32 = 4
    weight_bytes = f32 * (din * din + 3 * din + din * 3 * blk + 3 * blk)
    est = 2 * weight_bytes + 2 * f32 * tile_rows * (din + blk) + (4 << 20)
    cp_kwargs = dict(dimension_semantics=("parallel",))
    if est > (12 << 20):
        cp_kwargs["vmem_limit_bytes"] = int(min(est + (8 << 20), 96 << 20))

    out = pl.pallas_call(
        _adm_kernel,
        out_shape=jax.ShapeDtypeStruct((n_pad, blk), features.dtype),
        grid=grid,
        in_specs=in_specs,
        out_specs=row_spec_out,
        compiler_params=pltpu.CompilerParams(**cp_kwargs),
    )(
        x2d,
        b2(params["ln_gamma"]), b2(params["ln_beta"]),
        params["shared_w"], b2(params["shared_b"]),
        w_cat, b_cat,
    )

    out_shape = orig_shape[:-1] + (dout,)
    loc_out = out[:n, :dout].reshape(out_shape)
    desc_out = out[:n, dout:2 * dout].reshape(out_shape)
    return loc_out, desc_out


def _reference(features, params):
    """Pure-JAX mirror of the PyTorch forward (unfused, for correctness)."""
    x = features.astype(jnp.float32)
    mean = jnp.mean(x, axis=-1, keepdims=True)
    var = jnp.mean((x - mean) ** 2, axis=-1, keepdims=True)
    ln = (x - mean) / jnp.sqrt(var + LN_EPS)
    ln = ln * params["ln_gamma"] + params["ln_beta"]
    adjusted = ln + x @ params["shared_w"] + params["shared_b"]
    loc = adjusted @ params["loc_proj_w"] + params["loc_proj_b"]
    desc = adjusted @ params["desc_proj_w"] + params["desc_proj_b"]
    ca_loc = desc @ params["cross_w"] + params["cross_b"]
    ca_desc = loc @ params["cross_w"] + params["cross_b"]
    alpha = jax.nn.sigmoid(adjusted @ params["alpha_w"] + params["alpha_b"])
    beta = jax.nn.sigmoid(adjusted @ params["beta_w"] + params["beta_b"])
    return (loc + alpha * ca_loc, desc + beta * ca_desc)


if __name__ == "__main__":
    # Small shapes consistent with the module: features (batch, seq, input_dim).
    B, S, DIN, DOUT = 2, 8, 32, 32

    key = jax.random.PRNGKey(0)
    keys = jax.random.split(key, 17)

    def lin(kw, kb, fan_in, fan_out):
        lim = 1.0 / (fan_in ** 0.5)
        w = jax.random.uniform(kw, (fan_in, fan_out), jnp.float32, -lim, lim)
        b = jax.random.uniform(kb, (fan_out,), jnp.float32, -lim, lim)
        return w, b

    features = jax.random.normal(keys[0], (B, S, DIN), dtype=jnp.float32)

    shared_w, shared_b = lin(keys[1], keys[2], DIN, DIN)
    loc_w, loc_b = lin(keys[3], keys[4], DIN, DOUT)
    desc_w, desc_b = lin(keys[5], keys[6], DIN, DOUT)
    cross_w, cross_b = lin(keys[7], keys[8], DOUT, DOUT)
    alpha_w, alpha_b = lin(keys[9], keys[10], DIN, DOUT)
    beta_w, beta_b = lin(keys[11], keys[12], DIN, DOUT)

    params = dict(
        ln_gamma=jnp.ones((DIN,), jnp.float32),
        ln_beta=jnp.zeros((DIN,), jnp.float32),
        shared_w=shared_w, shared_b=shared_b,
        loc_proj_w=loc_w, loc_proj_b=loc_b,
        desc_proj_w=desc_w, desc_proj_b=desc_b,
        cross_w=cross_w, cross_b=cross_b,
        alpha_w=alpha_w, alpha_b=alpha_b,
        beta_w=beta_w, beta_b=beta_b,
    )

    ref_loc, ref_desc = _reference(features, params)

    # 1) explicit small tile -> 2 grid steps (exercises row tiling / pipelining)
    loc_out, desc_out = vectorized_adaptive_decoupling_forward(
        features, params, tile_rows=8)
    loc_out, desc_out = jax.block_until_ready((loc_out, desc_out))
    assert loc_out.shape == (B, S, DOUT) and desc_out.shape == (B, S, DOUT)
    assert loc_out.dtype == jnp.float32 and desc_out.dtype == jnp.float32
    assert jnp.allclose(loc_out, ref_loc, atol=5e-3, rtol=5e-3)
    assert jnp.allclose(desc_out, ref_desc, atol=5e-3, rtol=5e-3)

    # 2) default (generation-aware) tile sizing path
    loc2, desc2 = vectorized_adaptive_decoupling_forward(features, params)
    loc2, desc2 = jax.block_until_ready((loc2, desc2))
    assert jnp.allclose(loc2, ref_loc, atol=5e-3, rtol=5e-3)
    assert jnp.allclose(desc2, ref_desc, atol=5e-3, rtol=5e-3)

    print("KERNEL_OK")
</pallas_src>

<mosaic_0001>
module attributes {stable_mosaic.version = 11 : i64} {
  func.func @_adm_kernel(%arg0: i32, %arg1: memref<8x32xf32, #tpu.memory_space<vmem>>, %arg2: memref<1x32xf32, #tpu.memory_space<vmem>>, %arg3: memref<1x32xf32, #tpu.memory_space<vmem>>, %arg4: memref<32x32xf32, #tpu.memory_space<vmem>>, %arg5: memref<1x32xf32, #tpu.memory_space<vmem>>, %arg6: memref<32x384xf32, #tpu.memory_space<vmem>>, %arg7: memref<1x384xf32, #tpu.memory_space<vmem>>, %arg8: memref<8x128xf32, #tpu.memory_space<vmem>>) attributes {dimension_semantics = [#tpu.dimension_semantics<parallel>], iteration_bounds = array<i64: 2>, scalar_prefetch = 0 : i64, scratch_operands = 0 : i64, tpu.core_type = #tpu.core_type<tc>, window_params = [{transform_indices = @transform_0, window_bounds = array<i64: 8, 32>}, {pipeline_mode = #tpu.pipeline_mode<synchronous>, transform_indices = @transform_1, window_bounds = array<i64: 1, 32>}, {pipeline_mode = #tpu.pipeline_mode<synchronous>, transform_indices = @transform_2, window_bounds = array<i64: 1, 32>}, {pipeline_mode = #tpu.pipeline_mode<synchronous>, transform_indices = @transform_3, window_bounds = array<i64: 32, 32>}, {pipeline_mode = #tpu.pipeline_mode<synchronous>, transform_indices = @transform_4, window_bounds = array<i64: 1, 32>}, {pipeline_mode = #tpu.pipeline_mode<synchronous>, transform_indices = @transform_5, window_bounds = array<i64: 32, 384>}, {pipeline_mode = #tpu.pipeline_mode<synchronous>, transform_indices = @transform_6, window_bounds = array<i64: 1, 384>}, {transform_indices = @transform_7, window_bounds = array<i64: 8, 128>}]} {
    %c0 = arith.constant 0 : index
    %c0_0 = arith.constant 0 : index
    %0 = vector.load %arg1[%c0, %c0_0] : memref<8x32xf32, #tpu.memory_space<vmem>>, vector<8x32xf32>
    %cst = arith.constant dense<0.000000e+00> : vector<8xf32>
    %1 = vector.multi_reduction <add>, %0, %cst [1] : vector<8x32xf32> to vector<8xf32>
    %2 = vector.shape_cast %1 : vector<8xf32> to vector<8x1xf32>
    %cst_1 = arith.constant 3.200000e+01 : f32
    %3 = vector.broadcast %cst_1 : f32 to vector<8x1xf32>
    %4 = arith.divf %2, %3 : vector<8x1xf32>
    %5 = vector.broadcast %4 : vector<8x1xf32> to vector<8x32xf32>
    %6 = arith.subf %0, %5 : vector<8x32xf32>
    %7 = arith.mulf %6, %6 : vector<8x32xf32>
    %cst_2 = arith.constant dense<0.000000e+00> : vector<8xf32>
    %8 = vector.multi_reduction <add>, %7, %cst_2 [1] : vector<8x32xf32> to vector<8xf32>
    %9 = vector.shape_cast %8 : vector<8xf32> to vector<8x1xf32>
    %cst_3 = arith.constant 3.200000e+01 : f32
    %10 = vector.broadcast %cst_3 : f32 to vector<8x1xf32>
    %11 = arith.divf %9, %10 : vector<8x1xf32>
    %cst_4 = arith.constant 9.99999974E-6 : f32
    %12 = vector.broadcast %cst_4 : f32 to vector<8x1xf32>
    %13 = arith.addf %11, %12 : vector<8x1xf32>
    %14 = math.rsqrt %13 : vector<8x1xf32>
    %15 = vector.broadcast %14 : vector<8x1xf32> to vector<8x32xf32>
    %16 = arith.mulf %6, %15 : vector<8x32xf32>
    %c0_5 = arith.constant 0 : index
    %c0_6 = arith.constant 0 : index
    %17 = vector.load %arg2[%c0_5, %c0_6] : memref<1x32xf32, #tpu.memory_space<vmem>>, vector<1x32xf32>
    %18 = vector.broadcast %17 : vector<1x32xf32> to vector<8x32xf32>
    %19 = arith.mulf %16, %18 : vector<8x32xf32>
    %c0_7 = arith.constant 0 : index
    %c0_8 = arith.constant 0 : index
    %20 = vector.load %arg3[%c0_7, %c0_8] : memref<1x32xf32, #tpu.memory_space<vmem>>, vector<1x32xf32>
    %21 = vector.broadcast %20 : vector<1x32xf32> to vector<8x32xf32>
    %22 = arith.addf %19, %21 : vector<8x32xf32>
    %c0_9 = arith.constant 0 : index
    %c0_10 = arith.constant 0 : index
    %23 = vector.load %arg4[%c0_9, %c0_10] : memref<32x32xf32, #tpu.memory_space<vmem>>, vector<32x32xf32>
    %cst_11 = arith.constant dense<0.000000e+00> : vector<8x32xf32>
    %24 = tpu.matmul %0, %23, %cst_11 {dimension_numbers = #tpu.dot_dimension_numbers<[1], [0], [0], [1], [0, 0, 1, 1], [], []>} : vector<8x32xf32>, vector<32x32xf32>, vector<8x32xf32> -> vector<8x32xf32>
    %25 = arith.addf %22, %24 : vector<8x32xf32>
    %c0_12 = arith.constant 0 : index
    %c0_13 = arith.constant 0 : index
    %26 = vector.load %arg5[%c0_12, %c0_13] : memref<1x32xf32, #tpu.memory_space<vmem>>, vector<1x32xf32>
    %27 = vector.broadcast %26 : vector<1x32xf32> to vector<8x32xf32>
    %28 = arith.addf %25, %27 : vector<8x32xf32>
    %c0_14 = arith.constant 0 : index
    %c0_15 = arith.constant 0 : index
    %29 = vector.load %arg6[%c0_14, %c0_15] : memref<32x384xf32, #tpu.memory_space<vmem>>, vector<32x384xf32>
    %cst_16 = arith.constant dense<0.000000e+00> : vector<8x384xf32>
    %30 = tpu.matmul %28, %29, %cst_16 {dimension_numbers = #tpu.dot_dimension_numbers<[1], [0], [0], [1], [0, 0, 1, 1], [], []>} : vector<8x32xf32>, vector<32x384xf32>, vector<8x384xf32> -> vector<8x384xf32>
    %c0_17 = arith.constant 0 : index
    %c0_18 = arith.constant 0 : index
    %31 = vector.load %arg7[%c0_17, %c0_18] : memref<1x384xf32, #tpu.memory_space<vmem>>, vector<1x384xf32>
    %32 = vector.broadcast %31 : vector<1x384xf32> to vector<8x384xf32>
    %33 = arith.addf %30, %32 : vector<8x384xf32>
    %34 = vector.extract_strided_slice %33 {offsets = [0, 0], sizes = [8, 128], strides = [1, 1]} : vector<8x384xf32> to vector<8x128xf32>
    %35 = vector.extract_strided_slice %33 {offsets = [0, 128], sizes = [8, 128], strides = [1, 1]} : vector<8x384xf32> to vector<8x128xf32>
    %36 = arith.negf %35 : vector<8x128xf32>
    %37 = math.exp %36 : vector<8x128xf32>
    %cst_19 = arith.constant 1.000000e+00 : f32
    %38 = vector.broadcast %cst_19 : f32 to vector<8x128xf32>
    %39 = arith.addf %38, %37 : vector<8x128xf32>
    %40 = arith.divf %38, %39 : vector<8x128xf32>
    %41 = vector.extract_strided_slice %33 {offsets = [0, 256], sizes = [8, 128], strides = [1, 1]} : vector<8x384xf32> to vector<8x128xf32>
    %42 = arith.mulf %40, %41 : vector<8x128xf32>
    %43 = arith.addf %34, %42 : vector<8x128xf32>
    %c0_20 = arith.constant 0 : index
    %c0_21 = arith.constant 0 : index
    %44 = vector.load %arg8[%c0_20, %c0_21] : memref<8x128xf32, #tpu.memory_space<vmem>>, vector<8x128xf32>
    tpu.vector_store %arg8[%c0_20, %c0_21], %43 {strides = array<i32>} : memref<8x128xf32, #tpu.memory_space<vmem>>, vector<8x128xf32>,
    return
  }
  func.func @transform_0(%arg0: i32) -> (i32, i32) {
    %c0_i32 = arith.constant 0 : i32
    %c0_i32_0 = arith.constant 0 : i32
    return %arg0, %c0_i32 : i32, i32
  }
  func.func @transform_1(%arg0: i32) -> (i32, i32) {
    %c0_i32 = arith.constant 0 : i32
    %c0_i32_0 = arith.constant 0 : i32
    %c0_i32_1 = arith.constant 0 : i32
    return %c0_i32, %c0_i32_0 : i32, i32
  }
  func.func @transform_2(%arg0: i32) -> (i32, i32) {
    %c0_i32 = arith.constant 0 : i32
    %c0_i32_0 = arith.constant 0 : i32
    %c0_i32_1 = arith.constant 0 : i32
    return %c0_i32, %c0_i32_0 : i32, i32
  }
  func.func @transform_3(%arg0: i32) -> (i32, i32) {
    %c0_i32 = arith.constant 0 : i32
    %c0_i32_0 = arith.constant 0 : i32
    %c0_i32_1 = arith.constant 0 : i32
    return %c0_i32, %c0_i32_0 : i32, i32
  }
  func.func @transform_4(%arg0: i32) -> (i32, i32) {
    %c0_i32 = arith.constant 0 : i32
    %c0_i32_0 = arith.constant 0 : i32
    %c0_i32_1 = arith.constant 0 : i32
    return %c0_i32, %c0_i32_0 : i32, i32
  }
  func.func @transform_5(%arg0: i32) -> (i32, i32) {
    %c0_i32 = arith.constant 0 : i32
    %c0_i32_0 = arith.constant 0 : i32
    %c0_i32_1 = arith.constant 0 : i32
    return %c0_i32, %c0_i32_0 : i32, i32
  }
  func.func @transform_6(%arg0: i32) -> (i32, i32) {
    %c0_i32 = arith.constant 0 : i32
    %c0_i32_0 = arith.constant 0 : i32
    %c0_i32_1 = arith.constant 0 : i32
    return %c0_i32, %c0_i32_0 : i32, i32
  }
  func.func @transform_7(%arg0: i32) -> (i32, i32) {
    %c0_i32 = arith.constant 0 : i32
    %c0_i32_0 = arith.constant 0 : i32
    return %arg0, %c0_i32 : i32, i32
  }
}

</mosaic_0001>

<bundles_post_ra>
// kernel: tpu_custom_call.1
= control target key start
LH: loop header
LB: loop body
LE: loop exit
PB: predicated region body
PF: predicated region fallthrough
CT: control target
= control target key end

     0   :  { %s1175_s0 = inlined_call_operand.hbm [shape: f32[16,32], index: 0, kind: input, shape index: {}]   ;;  %s1176_s1 = inlined_call_operand.hbm [shape: f32[1,32], index: 1, kind: input, shape index: {}]   ;;  %s1177_s2 = inlined_call_operand.vmem [shape: f32[1,32], index: 2, kind: input, shape index: {}]   ;;  %s1178_s3 = inlined_call_operand.hbm [shape: f32[32,32], index: 3, kind: input, shape index: {}]   ;;  %s1179_s4 = inlined_call_operand.vmem [shape: f32[1,32], index: 4, kind: input, shape index: {}]   ;;  %s1180_s5 = inlined_call_operand.hbm [shape: f32[32,384], index: 5, kind: input, shape index: {}]   ;;  %s1181_s6 = inlined_call_operand.vmem [shape: f32[1,384], index: 6, kind: input, shape index: {}]   ;;  %s1182_s7 = inlined_call_operand.hbm [shape: f32[16,128], index: 7, kind: output, shape index: {}]  }
   0x1   :  { %1183 = sst [smem:[#allocation15_spill]] %s1176_s1 }
   0x2   :  { %12 = vsyncpa [#allocation3], 0 }
   0x3   :  { %14 = vsyncpa [#allocation3 + $0x1], 0 }
   0x4   :  { %15 = vsyncpa [#allocation6], 0 }
   0x5   :  { %16 = vsyncpa [#allocation9], 0 }
   0x6   :  { %17 = vsyncpa [#allocation4], 0 }
   0x7   :  { %19 = vsyncpa [#allocation4 + $0x1], 0  ;;  %s998_s24 = smov 0   ;;  %s1000_s25 = smov 0  }
   0x8   :  { %s1002_s26 = smov 0   ;;  %s1004_s27 = smov 0  }
   0x9 LB: > { %s1019_s28 = sadd.s32 4294967295, %s948_s27   ;;  %s638_s29 = sadd.s32 4294967294, %s948_s27   ;;  %s948_s27 = sphi %s1004_s27, %s1195_s27   ;;  %s944_s26 = sphi %s1002_s26, %s1194_s26   ;;  %s940_s25 = sphi %s1000_s25, %s1193_s25   ;;  %s936_s24 = sphi %s998_s24, %s1192_s24  }
   0xa   : > { %p45_p0 = scmp.ne.s32.totalorder %s940_s25, %s936_s24  ;;  %p46_p1 = scmp.eq.s32.totalorder %s1019_s28, 0 }
   0xb   : > { %p195_p2 = scmp.eq.s32.totalorder %s1019_s28, 1  ;;  %p201_p3 = scmp.eq.s32.totalorder %s638_s29, 1 }
   0xc   : > { %p1028_p4 = por %p46_p1, %p45_p0  ;;  %p639_p5 = scmp.ge.s32.totalorder %s948_s27, 1 }
   0xd   : > { %p1033_p6 = por %p201_p3, %p45_p0  ;;  %p208_p7 = scmp.lt.s32.totalorder %s948_s27, 3 }
   0xe   : > { %s1186_s1 = sld [smem:[#allocation15_spill]]  ;;  %s950_s13 = smov [#allocation5]  }
   0xf   : > { %p1041_p8 = pnand %p639_p5, %p208_p7  ;;  %s222_s14 = sshll.u32 %s950_s13, 4  ;;  %s223_s14 = int_to_ptr.vmem [resolvable:$true] %s222_s14 }
  0x10   : > { %s234_s17 = sshll.u32 %s1178_s3, 4  ;;  %s951_s19 = smov [#allocation7]   ;;  %s235_s17 = int_to_ptr.hbm [resolvable:$true] %s234_s17 }
  0x11   : > { %p677_p10 = pneg %p1041_p8  ;;  %s236_s20 = sshll.u32 %s951_s19, 4  ;;  %s237_s20 = int_to_ptr.vmem [resolvable:$true] %s236_s20 }
  0x12   : > { %s952_s21 = smov 128   ;;  %s953_s22 = smov 8  }
  0x13   : > { %p1053_p11 = pnand %p677_p10, %p46_p1  ;;  %s251_s9 = sshll.u32 %s1180_s5, 4  ;;  %s252_s9 = int_to_ptr.hbm [resolvable:$true] %s251_s9 }
  0x14   : > { %s220_s11 = sshll.u32 %s1186_s1, 4  ;;  %s954_s10 = smov [#allocation8]   ;;  %s221_s11 = int_to_ptr.hbm [resolvable:$true] %s220_s11 }
  0x15   : > { %680 = dma.hbm_to_vmem [thread:$0]  (!%p1053_p11), %s221_s11, 16, %s223_s14, [#allocation6]  }
  0x16   : > { %683 = dma.hbm_to_vmem [thread:$0]  (!%p1053_p11), %s235_s17, 512, %s237_s20, [#allocation6], %s952_s21, %s952_s21, %s953_s22  }
  0x17   : > { %s253_s11 = sshll.u32 %s954_s10, 4  ;;  %s955_s13 = smov 384   ;;  %s254_s11 = int_to_ptr.vmem [resolvable:$true] %s253_s11 }
  0x18   : > { %s956_s14 = smov 24   ;;  %s1067_s15 = sadd.s32 1, %s948_s27  }
  0x19   : > { %686 = dma.hbm_to_vmem [thread:$0]  (!%p1053_p11), %s252_s9, 1536, %s254_s11, [#allocation9], %s955_s13, %s955_s13, %s956_s14  }
  0x1a   : > { %s29_s16 = ssub.s32 %s948_s27, %s1067_s15  ;;  %s32_s17 = sadd.s32 1, %s944_s26 }
  0x1b   : > { %p30_p12 = scmp.eq.s32.totalorder %s29_s16, 0  ;;  %p39_p13 = scmp.ne.s32.totalorder %s944_s26, %s940_s25 }
  0x1c   : > { %p40_p0 = scmp.eq.s32.totalorder %s948_s27, 0  ;;  %p698_p5 = scmp.lt.s32.totalorder %s948_s27, 2 }
  0x1d   : > { %s1076_s19 = scalar_select %p30_p12, %s944_s26, %s32_s17  }
  0x1e   : > { %p1080_p3 = por %p195_p2, %p39_p13  ;;  %s270_s21 = sand.u32 1, %s944_s26  }
  0x1f   : > { %s645_s22 = sshll.u32 %s948_s27, 3  ;;  %p41_p7 = por %p40_p0, %p39_p13 }
  0x20   : > { %s644_s18 = sshll.u32 %s270_s21, 3  ;;  %s278_s9 = scalar_lea.hbm %s1175_s0, %s645_s22 }
  0x21   : > { %s280_s10 = sshll.u32 %s278_s9, 4  ;;  %s274_s11 = scalar_lea.vmem [#allocation2], %s644_s18  ;;  %s281_s10 = int_to_ptr.hbm [resolvable:$true] %s280_s10 }
  0x22   : > { %s282_s13 = sshll.u32 %s274_s11, 4  ;;  %p1090_p10 = pnand %p698_p5, %p41_p7  ;;  %s283_s13 = int_to_ptr.vmem [resolvable:$true] %s282_s13 }
  0x23   : > { %s271_s16 = scalar_lea.sflag [#allocation3], %s270_s21  ;;  %s844_s17 = sshra.s32 %s281_s10, 4  ;;  %s845_s17 = int_to_ptr.hbm [resolvable:$true] %s844_s17 }
  0x24   : > { %s846_s1 = scalar_lea.hbm %s845_s17, 8  ;;  %p848_p11 = pneg %p1090_p10 }
  0x25   : > { %p847_p2 = scmp.ne.s32.totalorder %s845_s17, %s846_s1  ;;  %s851_s18 = scalar_lea.hbm %s1175_s0, 16 }
  0x26   : > { %p852_p0 = scmp.lt.s32.totalorder %s845_s17, %s1175_s0  ;;  %p853_p5 = scmp.lt.s32.totalorder %s851_s18, %s846_s1 }
  0x27   : > { %p849_p12 = pnand %p848_p11, %p847_p2 }
  0x28   : > { %p854_p7 = por %p853_p5, %p852_p0 }
  0x29   : > { %p850_p13 = pneg %p849_p12 }
  0x2b   : > { %p855_p9 = pnand %p854_p7, %p850_p13 }
  0x2d   : > { %858 = shalt.err (!%p855_p9)
}
  0x2e   : > { %690 = dma.hbm_to_vmem [thread:$0]  (!%p1090_p10), %s281_s10, 128, %s283_s13, %s271_s16  }
  0x2f   : > { %291 = sbr.rel (%p1041_p8) target bundleno = 499 (0x1f3), region = 48  ;;  %s1107_s21 = sand.u32 (!%p1041_p8), 1, %s940_s25  }
  0x30   : > { %s647_s11 = sshll.u32 (!%p1041_p8), %s1107_s21, 3  ;;  %s294_s22 = scalar_lea.sflag (!%p1041_p8), [#allocation3], %s1107_s21 }
  0x31   : > { %s297_s1 = scalar_lea.vmem (!%p1041_p8), [#allocation2], %s647_s11 }
  0x34   : > { %919 = dma.done.wait (%p1028_p4), %s294_s22, 128  }
  0x35   : > { %921 = vsyncadd (%p1028_p4), %s294_s22, 4294967168 }
  0x36   : > { %923 = dma.done.wait (%p46_p1), [#allocation6], 528  }
  0x37   : > { %925 = vsyncadd (%p46_p1), [#allocation6], 4294966768 }
  0x38   : > { %927 = dma.done.wait (%p46_p1), [#allocation9], 1536  }
  0x39   : > { %929 = vsyncadd (%p46_p1), [#allocation9], 4294965760  ;;  %vm345_vm0 = vcmask 261120   ;;  %v344_v0 = vld [vmem:[%s297_s1] sm:$0xff]  ;;  %v957_v2 = vmov 32.0   ;;  %v385_v7 = vld [vmem:[#allocation7] sm:$0xff] }
  0x3a   : > { %v346_v1 = vsel %vm345_vm0, %v344_v0, 0.0  ;;  %746 = vrcp.f32 %v957_v2  ;;  %v388_v3 = vld [vmem:[#allocation7 + $0x18] sm:$0xff]  ;;  %v387_v4 = vld [vmem:[#allocation7 + $0x10] sm:$0xff]  ;;  %v386_v5 = vld [vmem:[#allocation7 + $0x8] sm:$0xff]  ;;  %s658_s17 = sshll.u32 %s1019_s28, 3  ;;  %s343_s28 = scalar_lea.vmem [#allocation10], %s647_s11 }
  0x3b   : > { %347 = vadd.xlane.f32.xlu0 %v346_v1  ;;  %404 = vmatpush.msra.mxu0 %v388_v3  ;;  %v427_v18 = vld [vmem:[#allocation8 + $0x48] sm:$0xff]  ;;  %v428_v19 = vld [vmem:[#allocation8 + $0x50] sm:$0xff]  ;;  %v429_v20 = vld [vmem:[#allocation8 + $0x58] sm:$0xff]  ;;  %s534_s29 = scalar_lea.hbm %s1182_s7, %s658_s17  ;;  %s536_s9 = sshll.u32 %s343_s28, 4  ;;  %s537_s9 = int_to_ptr.vmem [resolvable:$true] %s536_s9 }
  0x3c   : > { %453 = vmatpush.msra.mxu1 %v427_v18  ;;  %473 = vmatpush.msra.mxu2 %v428_v19  ;;  %v424_v21 = vld [vmem:[#allocation8 + $0x30] sm:$0xff]  ;;  %v425_v22 = vld [vmem:[#allocation8 + $0x38] sm:$0xff]  ;;  %v426_v23 = vld [vmem:[#allocation8 + $0x40] sm:$0xff]  ;;  %s538_s22 = sshll.u32 %s534_s29, 4  ;;  %s524_s1 = scalar_lea.sflag [#allocation4], %s1107_s21  ;;  %s539_s22 = int_to_ptr.hbm [resolvable:$true] %s538_s22 }
  0x3d   : > { %405 = vmatpush.msra.mxu0 %v387_v4  ;;  %493 = vmatpush.msra.mxu3 %v429_v20  ;;  %v421_v24 = vld [vmem:[#allocation8 + $0x18] sm:$0xff]  ;;  %v422_v25 = vld [vmem:[#allocation8 + $0x20] sm:$0xff]  ;;  %v423_v26 = vld [vmem:[#allocation8 + $0x28] sm:$0xff]  ;;  %s888_s30 = sshra.s32 %s539_s22, 4  ;;  %s894_s11 = scalar_lea.hbm %s1182_s7, 16  ;;  %s889_s30 = int_to_ptr.hbm [resolvable:$true] %s888_s30 }
  0x3e   : > { %454 = vmatpush.msra.mxu1 %v424_v21  ;;  %474 = vmatpush.msra.mxu2 %v425_v22  ;;  %v418_v27 = vld [vmem:[#allocation8] sm:$0xff]  ;;  %v419_v28 = vld [vmem:[#allocation8 + $0x8] sm:$0xff]  ;;  %v420_v29 = vld [vmem:[#allocation8 + $0x10] sm:$0xff]  ;;  %s890_s12 = scalar_lea.hbm %s889_s30, 8  ;;  %p895_p9 = scmp.lt.s32.totalorder %s889_s30, %s1182_s7 }
  0x3f   : > { %406 = vmatpush.msra.mxu0 %v386_v5  ;;  %494 = vmatpush.msra.mxu3 %v426_v23  ;;  %v743_v39 = vld [vmem:[#allocation5] ss:$0 sm:$0xff]  ;;  %v744_v42 = vld [vmem:[%s1177_s2] ss:$0 sm:$0xff]  ;;  %p891_p1 = scmp.ne.s32.totalorder %s889_s30, %s890_s12  ;;  %p896_p10 = scmp.lt.s32.totalorder %s894_s11, %s890_s12 }
  0x40   : > { %v747_v6 = vpop.eup %746  ;;  %455 = vmatpush.msra.mxu1 %v421_v24  ;;  %475 = vmatpush.msra.mxu2 %v422_v25  ;;  %v745_v46 = vld [vmem:[%s1179_s4] ss:$0 sm:$0xff] }
  0x41   : > { %v350_v8 = vmul.f32 32.0, %v747_v6  ;;  %407 = vmatpush.msra.mxu0 %v385_v7  ;;  %vm354_vm1 = vweird.f32 %v747_v6  ;;  %495 = vmatpush.msra.mxu3 %v423_v26  ;;  %v430_v49 = vld [vmem:[%s1181_s6] sm:$0x7]  ;;  %p892_p4 = pnand %p891_p1, %p1080_p3  ;;  %p897_p2 = por %p896_p10, %p895_p9 }
  0x42   : > { %652 = vmatmul.msk.f32.vlgmr.msra.gmra.mxu0 %vm345_vm0, %v344_v0  ;;  %456 = vmatpush.msra.mxu1 %v418_v27  ;;  %v433_v50 = vperm.slane %v430_v49, 1  ;;  %v434_v60 = vperm.slane %v430_v49, 2 }
  0x43   : > { %v351_v9 = vsub.f32 1.0, %v350_v8  ;;  %476 = vmatpush.msra.mxu2 %v419_v28  ;;  %496 = vmatpush.msra.mxu3 %v420_v29  ;;  %p893_p8 = pneg %p892_p4 }
  0x45   : > { %v352_v10 = vmul.f32 %v747_v6, %v351_v9  ;;  %p898_p11 = pnand %p897_p2, %p893_p8 }
  0x47   : > { %v353_v11 = vadd.f32 %v747_v6, %v352_v10 }
  0x49   : > { %v355_v12 = vsel %vm354_vm1, %v747_v6, %v353_v11 }
  0xae   : > { %v348_v13 = vpop.xlane.xlu0 %347 }
  0xaf   : > { %v356_v14 = vmul.f32 %v355_v12, %v348_v13 }
  0xb1   : > { %v357_v15 = vsub.f32 %v344_v0, %v356_v14  ;;  %v432_v0 = vperm.slane %v430_v49, 0 }
  0xb3   : > { %v358_v16 = vmul.f32 %v357_v15, %v357_v15 }
  0xb5   : > { %v359_v17 = vsel %vm345_vm0, %v358_v16, 0.0 }
  0xb6   : > { %360 = vadd.xlane.f32.xlu0 %v359_v17 }
  0xbf   : > { %v409_v44 = vpop.f32.mrf.mxu0 }
 0x129   : > { %v361_v30 = vpop.xlane.xlu0 %360 }
 0x12a   : > { %v362_v31 = vmul.f32 %v361_v30, %v355_v12 }
 0x12c   : > { %v363_v32 = vadd.f32 1e-05, %v362_v31 }
 0x12e   : > { %748 = vrsqrt.f32 %v363_v32  ;;  %vm370_vm3 = vweird.f32 %v363_v32 }
 0x134   : > { %v749_v33 = vpop.eup %748 }
 0x135   : > { %v365_v34 = vmul.f32 %v749_v33, %v363_v32  ;;  %vm371_vm2 = vweird.f32 %v749_v33 }
 0x136   : > { %vm372_vm4 = vmor %vm370_vm3, %vm371_vm2 }
 0x137   : > { %v366_v35 = vmul.f32 %v749_v33, %v365_v34 }
 0x139   : > { %v367_v36 = vmul.f32 0.5, %v366_v35 }
 0x13b   : > { %v368_v37 = vsub.f32 1.5, %v367_v36 }
 0x13d   : > { %v369_v38 = vmul.f32 %v749_v33, %v368_v37 }
 0x13f   : > { %v373_v40 = vsel %vm372_vm4, %v749_v33, %v369_v38 }
 0x140   : > { %v374_v41 = vmul.f32 %v373_v40, %v357_v15 }
 0x142   : > { %v379_v43 = vmul.f32 %v743_v39, %v374_v41 }
 0x144   : > { %v384_v45 = vadd.f32 %v744_v42, %v379_v43 }
 0x146   : > { %v412_v47 = vadd.f32 %v409_v44, %v384_v45 }
 0x148   : > { %v417_v48 = vadd.f32 %v745_v46, %v412_v47 }
 0x14a   : > { %653 = vmatmul.msk.f32.vlgmr.msra.gmra.mxu1 %vm345_vm0, %v417_v48  ;;  %654 = vmatmul.msk.f32.vlgmr.msra.gmra.mxu2 %vm345_vm0, %v417_v48 }
 0x14b   : > { %655 = vmatmul.msk.f32.vlgmr.msra.gmra.mxu3 %vm345_vm0, %v417_v48 }
 0x1c7   : > { %v458_v2 = vpop.f32.mrf.mxu1 }
 0x1c8   : > { %v459_v7 = vadd.f32 %v458_v2, %v432_v0 }
 0x1cd   : > { %v478_v51 = vpop.f32.mrf.mxu2 }
 0x1ce   : > { %v479_v52 = vadd.f32 %v478_v51, %v433_v50  ;;  %v498_v63 = vpop.f32.mrf.mxu3 }
 0x1cf   : > { %v499_v4 = vadd.f32 %v498_v63, %v434_v60 }
 0x1d0   : > { %v656_v53 = vmul.f32 -1.442695, %v479_v52 }
 0x1d2   : > { %750 = vpow2.f32 %v656_v53 }
 0x1d8   : > { %v751_v54 = vpop.eup %750 }
 0x1d9   : > { %v504_v55 = vadd.f32 1.0, %v751_v54 }
 0x1db   : > { %752 = vrcp.f32 %v504_v55  ;;  %v516_v59 = vand.u32 2147483648, %v504_v55  ;;  %v514_v62 = vand.u32 2147483647, %v504_v55  ;;  %vm510_vm6 = vweird.f32 %v504_v55 }
 0x1dd   : > { %v517_v3 = vor.u32 1.1754944e-38, %v516_v59  ;;  %vm515_vm8 = vcmp.eq.f32.partialorder %v514_v62, 8.507059e+37 }
 0x1e1   : > { %v753_v56 = vpop.eup %752 }
 0x1e2   : > { %v506_v57 = vmul.f32 %v753_v56, %v504_v55  ;;  %vm511_vm5 = vweird.f32 %v753_v56 }
 0x1e3   : > { %vm512_vm7 = vmor %vm510_vm6, %vm511_vm5 }
 0x1e4   : > { %v507_v58 = vsub.f32 1.0, %v506_v57 }
 0x1e6   : > { %v508_v61 = vmul.f32 %v753_v56, %v507_v58 }
 0x1e8   : > { %v509_v1 = vadd.f32 %v753_v56, %v508_v61 }
 0x1ea   : > { %v513_v5 = vsel %vm512_vm7, %v753_v56, %v509_v1 }
 0x1eb   : > { %v518_v6 = vsel %vm515_vm8, %v517_v3, %v513_v5 }
 0x1ec   : > { %v520_v8 = vmul.f32 %v518_v6, %v499_v4 }
 0x1ee   : > { %v521_v9 = vadd.f32 %v520_v8, %v459_v7 }
 0x1f0   : > { %522 = vst [vmem:[%s343_s28] sm:$0xff] %v521_v9 }
 0x1f1   : > { %901 = shalt.err (!%p898_p11)
}
 0x1f2   : > { %675 = dma.vmem_to_hbm [thread:$0]  (%p1080_p3), %s537_s9, 128, %s539_s22, %s524_s1  }
 0x1f3 PF: > { %s550_s21 = sand.u32 1, %s936_s24   ;;  %p1191_p12 = scmp.ge.s32.totalorder %s948_s27, 2 }
 0x1f4   : > { %s551_s17 = scalar_lea.sflag [#allocation4], %s550_s21 }
 0x1f5   : > { %p692_p13 = pnand %p1191_p12, %p1033_p6 }
 0x1f7   : > { %p693_p0 = pneg %p692_p13 }
 0x1f9   : > { %931 = dma.done.wait (%p693_p0), %s551_s17, 128  }
 0x1fa   : > { %933 = vsyncadd (%p693_p0), %s551_s17, 4294967168  ;;  %p22_p5 = scmp.ge.s32.totalorder %s1067_s15, 4   ;;  %s1192_s24 = smov %s940_s25 }
 0x1fb   : > { %s1193_s25 = smov %s944_s26  ;;  %s1194_s26 = smov %s1076_s19 }
 0x1fc   : > { %s1195_s27 = smov %s1067_s15  ;;  %24 = sbr.rel (!%p22_p5) target bundleno = 9 (0x9), region = 105 }
 0x201   :  { %557 = vsyncpa [#allocation3], 1 }
 0x202   :  { %559 = vsyncpa [#allocation3 + $0x1], 1 }
 0x203   :  { %560 = vsyncpa [#allocation6], 1 }
 0x204   :  { %561 = vsyncpa [#allocation9], 1 }
 0x205   :  { %562 = vsyncpa [#allocation4], 1 }
 0x206   :  { %564 = vsyncpa [#allocation4 + $0x1], 1 }

</bundles_post_ra>
